<compile_context>
chip_gen: v7x
topology: tpu7x:2x2x1
jax: 0.10.0
libtpu: 0.0.40
codegen_flags: <defaults>
</compile_context>

<pallas_src>
import jax
import jax.numpy as jnp
from jax.experimental import pallas as pl
from jax.experimental.pallas import tpu as pltpu


def _make_ca_kernel(inv_h, inv_w, out_dtype):
    """Kernel body. inv_h/inv_w are static Python floats (mean scales)."""

    def _sigmoid(z):
        # exact sigmoid via tanh -- rides the EUP, no approx-reciprocal error
        return 0.5 * jnp.tanh(0.5 * z) + 0.5

    def kernel(x_ref, ph_ref, pw_ref, w1_ref, bias_ref,
               fh_ref, fw_ref, eh_ref, ew_ref, o_ref):
        xb = x_ref[...]                                   # (bn*C, HW), caller dtype
        x16 = xb.astype(jnp.bfloat16)

        # --- coordinate pooling on the MXU (bf16 ops, f32 accumulation);
        #     mean scales stay in f32 after the matmul ------------------------
        pooled_h = jnp.dot(x16, ph_ref[...],
                           preferred_element_type=jnp.float32) * inv_w    # (bn*C, H)
        pooled_w = jnp.dot(x16, pw_ref[...],
                           preferred_element_type=jnp.float32) * inv_h    # (bn*C, W)

        # --- squeeze 1x1 conv (eval-BN scale folded into weight) + bias + ReLU.
        #     Block-diagonal weight handles the whole batch chunk at once. ----
        w1 = w1_ref[...]
        b = bias_ref[...]
        y_h = jnp.maximum(jnp.dot(w1, pooled_h.astype(jnp.bfloat16),
                                  preferred_element_type=jnp.float32) + b, 0.0)
        y_w = jnp.maximum(jnp.dot(w1, pooled_w.astype(jnp.bfloat16),
                                  preferred_element_type=jnp.float32) + b, 0.0)

        # --- excite 1x1 convs + exact sigmoid (no structurally-zero halves) --
        s_h = _sigmoid(jnp.dot(fh_ref[...], y_h.astype(jnp.bfloat16),
                               preferred_element_type=jnp.float32))        # (bn*C, H)
        s_w = _sigmoid(jnp.dot(fw_ref[...], y_w.astype(jnp.bfloat16),
                               preferred_element_type=jnp.float32))        # (bn*C, W)

        # --- broadcast back onto the flat (lane-dense) spatial axis via MXU --
        sh_x = jnp.dot(s_h.astype(jnp.bfloat16), eh_ref[...],
                       preferred_element_type=jnp.float32)                 # (bn*C, HW)
        sw_x = jnp.dot(s_w.astype(jnp.bfloat16), ew_ref[...],
                       preferred_element_type=jnp.float32)                 # (bn*C, HW)

        o_ref[...] = (xb.astype(jnp.float32) * sh_x * sw_x).astype(out_dtype)

    return kernel


def _tensorcores_per_device():
    """Rough TC-count heuristic (perf-only; correctness does not depend on it)."""
    try:
        kind = jax.devices()[0].device_kind.lower()
    except Exception:
        return 1
    return 2 if ("v7" in kind or "v4" in kind or "v5p" in kind) else 1


def _pick_block_n(n, per_batch_bytes, num_tc, target_bytes=4 << 20, max_bn=8):
    """Batch elements per grid step.

    Single-TC chips (v5e/v6e): fewest, fattest steps (amortize ~0.35us/step).
    Multi-TC chips (v4/v5p/v7x): keep >= 2 'parallel' steps so both cores work.
    """
    bn = int(max(1, min(n, target_bytes // max(per_batch_bytes, 1))))
    if num_tc > 1 and n >= 2:
        bn = min(bn, max(1, n // 2))
    bn = max(1, min(bn, max_bn))
    while n % bn:
        bn -= 1
    return bn


def ca_block(x, w1, bn_scale, bn_bias, wh, ww, *, block_n=None):
    """Coordinate-attention forward (eval-mode BN).

    x: (N, C, H, W). w1: (Cr, C). bn_scale/bn_bias: (Cr, 1) folded eval-mode
    BatchNorm. wh/ww: (C, Cr).
    """
    n, c, h, w = x.shape
    cr = w1.shape[0]
    hw = h * w

    if block_n is None:
        itemsize = jnp.dtype(x.dtype).itemsize
        block_n = _pick_block_n(n, c * hw * itemsize, _tensorcores_per_device())
    assert n % block_n == 0
    grid = (n // block_n,)
    bnc = block_n * c

    # --- lane-dense flattened-spatial slab, kept in the caller's dtype -------
    x2 = x.reshape(n * c, hw)

    # --- constant 0/1 pooling / expansion matrices (exact in bf16) -----------
    pos = jnp.arange(hw)
    onehot_h = ((pos // w)[:, None] == jnp.arange(h)[None, :]).astype(jnp.float32)  # (HW,H)
    onehot_w = ((pos % w)[:, None] == jnp.arange(w)[None, :]).astype(jnp.float32)   # (HW,W)
    pool_h = onehot_h.astype(jnp.bfloat16)         # (HW, H): sum over W per h
    pool_w = onehot_w.astype(jnp.bfloat16)         # (HW, W): sum over H per w
    expand_h = onehot_h.T.astype(jnp.bfloat16)     # (H, HW): broadcast over W
    expand_w = onehot_w.T.astype(jnp.bfloat16)     # (W, HW): broadcast over H

    # --- fold eval-mode BN scale into the squeeze weight; replicate weights
    #     block-diagonally so one 2-D dot covers the whole batch chunk --------
    eye_bn = jnp.eye(block_n, dtype=jnp.float32)
    w1f = bn_scale.reshape(cr, 1).astype(jnp.float32) * w1.astype(jnp.float32)
    w1_bd = jnp.kron(eye_bn, w1f).astype(jnp.bfloat16)                    # (bn*Cr, bn*C)
    bias_bd = jnp.tile(bn_bias.reshape(cr, 1).astype(jnp.float32),
                       (block_n, 1))                                      # (bn*Cr, 1)
    fh_bd = jnp.kron(eye_bn, wh.astype(jnp.float32)).astype(jnp.bfloat16)  # (bn*C, bn*Cr)
    fw_bd = jnp.kron(eye_bn, ww.astype(jnp.float32)).astype(jnp.bfloat16)  # (bn*C, bn*Cr)

    consts = (pool_h, pool_w, w1_bd, bias_bd, fh_bd, fw_bd, expand_h, expand_w)

    def const_spec(a):
        # TODO(synk): pipeline_mode=pl.Buffered(1) on these never-refetched
        # constants would halve their VMEM footprint (matters on v7x's 64 MiB).
        return pl.BlockSpec(a.shape, lambda i: (0, 0))

    x_spec = pl.BlockSpec((bnc, hw), lambda i: (i, 0))

    # --- explicit VMEM budget: double-buffered x/out slabs + constants -------
    itemsize = jnp.dtype(x.dtype).itemsize
    slab_bytes = bnc * hw * itemsize
    const_bytes = sum(int(a.size) * jnp.dtype(a.dtype).itemsize for a in consts)
    vmem_limit = int(min(max(4 * slab_bytes + 2 * const_bytes + (16 << 20),
                             32 << 20), 100 << 20))

    out2 = pl.pallas_call(
        _make_ca_kernel(1.0 / h, 1.0 / w, x.dtype),
        out_shape=jax.ShapeDtypeStruct((n * c, hw), x.dtype),
        grid_spec=pltpu.PrefetchScalarGridSpec(
            num_scalar_prefetch=0,
            grid=grid,
            in_specs=[x_spec] + [const_spec(a) for a in consts],
            out_specs=x_spec,
        ),
        compiler_params=pltpu.CompilerParams(
            dimension_semantics=("parallel",),
            vmem_limit_bytes=vmem_limit),
    )(x2, *consts)

    return out2.reshape(n, c, h, w)


def ca_block_ref(x, w1, bn_scale, bn_bias, wh, ww):
    """Pure-JAX reference mirroring the PyTorch forward (eval-mode BN)."""
    x_h = jnp.mean(x, axis=3)                                  # (N, C, H)
    x_w = jnp.mean(x, axis=2)                                  # (N, C, W)
    y_h = jnp.einsum("rc,nch->nrh", w1, x_h)
    y_w = jnp.einsum("rc,ncw->nrw", w1, x_w)
    y_h = jnp.maximum(y_h * bn_scale[None] + bn_bias[None], 0.0)
    y_w = jnp.maximum(y_w * bn_scale[None] + bn_bias[None], 0.0)
    s_h = jax.nn.sigmoid(jnp.einsum("cr,nrh->nch", wh, y_h))   # (N, C, H)
    s_w = jax.nn.sigmoid(jnp.einsum("cr,nrw->ncw", ww, y_w))   # (N, C, W)
    return x * s_h[:, :, :, None] * s_w[:, :, None, :]


if __name__ == "__main__":
    # Small but representative shapes: channel divisible by reduction,
    # H*W = 256 >= 128 keeps the flattened-spatial layout lane-dense.
    N, C, H, W = 2, 32, 16, 16
    reduction = 4
    Cr = C // reduction

    key = jax.random.PRNGKey(0)
    k_x, k_w1, k_wh, k_ww = jax.random.split(key, 4)

    x = jax.random.normal(k_x, (N, C, H, W), dtype=jnp.float32)

    # 1x1 conv weights == channel matmuls.
    w1 = 0.1 * jax.random.normal(k_w1, (Cr, C), dtype=jnp.float32)   # conv_1x1
    wh = 0.1 * jax.random.normal(k_wh, (C, Cr), dtype=jnp.float32)   # F_h
    ww = 0.1 * jax.random.normal(k_ww, (C, Cr), dtype=jnp.float32)   # F_w

    # BatchNorm2d (eval mode) parameters, folded into scale/bias.
    eps = 1e-5
    gamma = 1.0 + 0.05 * jnp.arange(Cr, dtype=jnp.float32)
    beta = 0.01 * jnp.arange(Cr, dtype=jnp.float32)
    running_mean = 0.02 * jnp.arange(Cr, dtype=jnp.float32)
    running_var = 1.0 + 0.03 * jnp.arange(Cr, dtype=jnp.float32)
    bn_scale = (gamma / jnp.sqrt(running_var + eps)).reshape(Cr, 1)
    bn_bias = (beta - running_mean * gamma /
               jnp.sqrt(running_var + eps)).reshape(Cr, 1)

    out = ca_block(x, w1, bn_scale, bn_bias, wh, ww)
    out = jax.block_until_ready(out)

    ref = ca_block_ref(x, w1, bn_scale, bn_bias, wh, ww)
    assert out.shape == (N, C, H, W)
    # Tolerance covers bf16 MXU operands (f32 accumulation, exact sigmoid).
    assert jnp.allclose(out, ref, rtol=2e-2, atol=2e-3), (
        float(jnp.max(jnp.abs(out - ref))))

    print("KERNEL_OK")
</pallas_src>

<mosaic_0001>
module attributes {stable_mosaic.version = 11 : i64} {
  func.func @kernel(%arg0: i32, %arg1: memref<64x256xf32, #tpu.memory_space<vmem>>, %arg2: memref<256x16xbf16, #tpu.memory_space<vmem>>, %arg3: memref<256x16xbf16, #tpu.memory_space<vmem>>, %arg4: memref<16x64xbf16, #tpu.memory_space<vmem>>, %arg5: memref<16x1xf32, #tpu.memory_space<vmem>>, %arg6: memref<64x16xbf16, #tpu.memory_space<vmem>>, %arg7: memref<64x16xbf16, #tpu.memory_space<vmem>>, %arg8: memref<16x256xbf16, #tpu.memory_space<vmem>>, %arg9: memref<16x256xbf16, #tpu.memory_space<vmem>>, %arg10: memref<64x256xf32, #tpu.memory_space<vmem>>) attributes {dimension_semantics = [#tpu.dimension_semantics<parallel>], iteration_bounds = array<i64: 1>, scalar_prefetch = 0 : i64, scratch_operands = 0 : i64, tpu.core_type = #tpu.core_type<tc>, window_params = [{transform_indices = @transform_0, window_bounds = array<i64: 64, 256>}, {pipeline_mode = #tpu.pipeline_mode<synchronous>, transform_indices = @transform_1, window_bounds = array<i64: 256, 16>}, {pipeline_mode = #tpu.pipeline_mode<synchronous>, transform_indices = @transform_2, window_bounds = array<i64: 256, 16>}, {pipeline_mode = #tpu.pipeline_mode<synchronous>, transform_indices = @transform_3, window_bounds = array<i64: 16, 64>}, {pipeline_mode = #tpu.pipeline_mode<synchronous>, transform_indices = @transform_4, window_bounds = array<i64: 16, 1>}, {pipeline_mode = #tpu.pipeline_mode<synchronous>, transform_indices = @transform_5, window_bounds = array<i64: 64, 16>}, {pipeline_mode = #tpu.pipeline_mode<synchronous>, transform_indices = @transform_6, window_bounds = array<i64: 64, 16>}, {pipeline_mode = #tpu.pipeline_mode<synchronous>, transform_indices = @transform_7, window_bounds = array<i64: 16, 256>}, {pipeline_mode = #tpu.pipeline_mode<synchronous>, transform_indices = @transform_8, window_bounds = array<i64: 16, 256>}, {transform_indices = @transform_9, window_bounds = array<i64: 64, 256>}]} {
    %c0 = arith.constant 0 : index
    %c0_0 = arith.constant 0 : index
    %0 = vector.load %arg1[%c0, %c0_0] : memref<64x256xf32, #tpu.memory_space<vmem>>, vector<64x256xf32>
    %1 = arith.truncf %0 : vector<64x256xf32> to vector<64x256xbf16>
    %c0_1 = arith.constant 0 : index
    %c0_2 = arith.constant 0 : index
    %2 = vector.load %arg2[%c0_1, %c0_2] : memref<256x16xbf16, #tpu.memory_space<vmem>>, vector<256x16xbf16>
    %cst = arith.constant dense<0.000000e+00> : vector<64x16xf32>
    %3 = tpu.matmul %1, %2, %cst {dimension_numbers = #tpu.dot_dimension_numbers<[1], [0], [0], [1], [0, 0, 1, 1], [], []>} : vector<64x256xbf16>, vector<256x16xbf16>, vector<64x16xf32> -> vector<64x16xf32>
    %cst_3 = arith.constant 6.250000e-02 : f32
    %4 = vector.broadcast %cst_3 : f32 to vector<64x16xf32>
    %5 = arith.mulf %3, %4 : vector<64x16xf32>
    %c0_4 = arith.constant 0 : index
    %c0_5 = arith.constant 0 : index
    %6 = vector.load %arg3[%c0_4, %c0_5] : memref<256x16xbf16, #tpu.memory_space<vmem>>, vector<256x16xbf16>
    %cst_6 = arith.constant dense<0.000000e+00> : vector<64x16xf32>
    %7 = tpu.matmul %1, %6, %cst_6 {dimension_numbers = #tpu.dot_dimension_numbers<[1], [0], [0], [1], [0, 0, 1, 1], [], []>} : vector<64x256xbf16>, vector<256x16xbf16>, vector<64x16xf32> -> vector<64x16xf32>
    %cst_7 = arith.constant 6.250000e-02 : f32
    %8 = vector.broadcast %cst_7 : f32 to vector<64x16xf32>
    %9 = arith.mulf %7, %8 : vector<64x16xf32>
    %c0_8 = arith.constant 0 : index
    %c0_9 = arith.constant 0 : index
    %10 = vector.load %arg4[%c0_8, %c0_9] : memref<16x64xbf16, #tpu.memory_space<vmem>>, vector<16x64xbf16>
    %c0_10 = arith.constant 0 : index
    %c0_11 = arith.constant 0 : index
    %11 = vector.load %arg5[%c0_10, %c0_11] : memref<16x1xf32, #tpu.memory_space<vmem>>, vector<16x1xf32>
    %12 = arith.truncf %5 : vector<64x16xf32> to vector<64x16xbf16>
    %cst_12 = arith.constant dense<0.000000e+00> : vector<16x16xf32>
    %13 = tpu.matmul %10, %12, %cst_12 {dimension_numbers = #tpu.dot_dimension_numbers<[1], [0], [0], [1], [0, 0, 1, 1], [], []>} : vector<16x64xbf16>, vector<64x16xbf16>, vector<16x16xf32> -> vector<16x16xf32>
    %14 = vector.broadcast %11 : vector<16x1xf32> to vector<16x16xf32>
    %15 = arith.addf %13, %14 : vector<16x16xf32>
    %cst_13 = arith.constant 0.000000e+00 : f32
    %16 = vector.broadcast %cst_13 : f32 to vector<16x16xf32>
    %17 = arith.maximumf %15, %16 : vector<16x16xf32>
    %18 = arith.truncf %9 : vector<64x16xf32> to vector<64x16xbf16>
    %cst_14 = arith.constant dense<0.000000e+00> : vector<16x16xf32>
    %19 = tpu.matmul %10, %18, %cst_14 {dimension_numbers = #tpu.dot_dimension_numbers<[1], [0], [0], [1], [0, 0, 1, 1], [], []>} : vector<16x64xbf16>, vector<64x16xbf16>, vector<16x16xf32> -> vector<16x16xf32>
    %20 = vector.broadcast %11 : vector<16x1xf32> to vector<16x16xf32>
    %21 = arith.addf %19, %20 : vector<16x16xf32>
    %cst_15 = arith.constant 0.000000e+00 : f32
    %22 = vector.broadcast %cst_15 : f32 to vector<16x16xf32>
    %23 = arith.maximumf %21, %22 : vector<16x16xf32>
    %c0_16 = arith.constant 0 : index
    %c0_17 = arith.constant 0 : index
    %24 = vector.load %arg6[%c0_16, %c0_17] : memref<64x16xbf16, #tpu.memory_space<vmem>>, vector<64x16xbf16>
    %25 = arith.truncf %17 : vector<16x16xf32> to vector<16x16xbf16>
    %cst_18 = arith.constant dense<0.000000e+00> : vector<64x16xf32>
    %26 = tpu.matmul %24, %25, %cst_18 {dimension_numbers = #tpu.dot_dimension_numbers<[1], [0], [0], [1], [0, 0, 1, 1], [], []>} : vector<64x16xbf16>, vector<16x16xbf16>, vector<64x16xf32> -> vector<64x16xf32>
    %cst_19 = arith.constant 5.000000e-01 : f32
    %27 = vector.broadcast %cst_19 : f32 to vector<64x16xf32>
    %28 = arith.mulf %27, %26 : vector<64x16xf32>
    %29 = math.tanh %28 : vector<64x16xf32>
    %cst_20 = arith.constant 5.000000e-01 : f32
    %30 = vector.broadcast %cst_20 : f32 to vector<64x16xf32>
    %31 = arith.mulf %30, %29 : vector<64x16xf32>
    %cst_21 = arith.constant 5.000000e-01 : f32
    %32 = vector.broadcast %cst_21 : f32 to vector<64x16xf32>
    %33 = arith.addf %31, %32 : vector<64x16xf32>
    %c0_22 = arith.constant 0 : index
    %c0_23 = arith.constant 0 : index
    %34 = vector.load %arg7[%c0_22, %c0_23] : memref<64x16xbf16, #tpu.memory_space<vmem>>, vector<64x16xbf16>
    %35 = arith.truncf %23 : vector<16x16xf32> to vector<16x16xbf16>
    %cst_24 = arith.constant dense<0.000000e+00> : vector<64x16xf32>
    %36 = tpu.matmul %34, %35, %cst_24 {dimension_numbers = #tpu.dot_dimension_numbers<[1], [0], [0], [1], [0, 0, 1, 1], [], []>} : vector<64x16xbf16>, vector<16x16xbf16>, vector<64x16xf32> -> vector<64x16xf32>
    %cst_25 = arith.constant 5.000000e-01 : f32
    %37 = vector.broadcast %cst_25 : f32 to vector<64x16xf32>
    %38 = arith.mulf %37, %36 : vector<64x16xf32>
    %39 = math.tanh %38 : vector<64x16xf32>
    %cst_26 = arith.constant 5.000000e-01 : f32
    %40 = vector.broadcast %cst_26 : f32 to vector<64x16xf32>
    %41 = arith.mulf %40, %39 : vector<64x16xf32>
    %cst_27 = arith.constant 5.000000e-01 : f32
    %42 = vector.broadcast %cst_27 : f32 to vector<64x16xf32>
    %43 = arith.addf %41, %42 : vector<64x16xf32>
    %44 = arith.truncf %33 : vector<64x16xf32> to vector<64x16xbf16>
    %c0_28 = arith.constant 0 : index
    %c0_29 = arith.constant 0 : index
    %45 = vector.load %arg8[%c0_28, %c0_29] : memref<16x256xbf16, #tpu.memory_space<vmem>>, vector<16x256xbf16>
    %cst_30 = arith.constant dense<0.000000e+00> : vector<64x256xf32>
    %46 = tpu.matmul %44, %45, %cst_30 {dimension_numbers = #tpu.dot_dimension_numbers<[1], [0], [0], [1], [0, 0, 1, 1], [], []>} : vector<64x16xbf16>, vector<16x256xbf16>, vector<64x256xf32> -> vector<64x256xf32>
    %47 = arith.truncf %43 : vector<64x16xf32> to vector<64x16xbf16>
    %c0_31 = arith.constant 0 : index
    %c0_32 = arith.constant 0 : index
    %48 = vector.load %arg9[%c0_31, %c0_32] : memref<16x256xbf16, #tpu.memory_space<vmem>>, vector<16x256xbf16>
    %cst_33 = arith.constant dense<0.000000e+00> : vector<64x256xf32>
    %49 = tpu.matmul %47, %48, %cst_33 {dimension_numbers = #tpu.dot_dimension_numbers<[1], [0], [0], [1], [0, 0, 1, 1], [], []>} : vector<64x16xbf16>, vector<16x256xbf16>, vector<64x256xf32> -> vector<64x256xf32>
    %50 = arith.mulf %0, %46 : vector<64x256xf32>
    %51 = arith.mulf %50, %49 : vector<64x256xf32>
    %c0_34 = arith.constant 0 : index
    %c0_35 = arith.constant 0 : index
    %52 = vector.load %arg10[%c0_34, %c0_35] : memref<64x256xf32, #tpu.memory_space<vmem>>, vector<64x256xf32>
    tpu.vector_store %arg10[%c0_34, %c0_35], %51 {strides = array<i32>} : memref<64x256xf32, #tpu.memory_space<vmem>>, vector<64x256xf32>,
    return
  }
  func.func @transform_0(%arg0: i32) -> (i32, i32) {
    %c0_i32 = arith.constant 0 : i32
    %c0_i32_0 = arith.constant 0 : i32
    return %arg0, %c0_i32 : i32, i32
  }
  func.func @transform_1(%arg0: i32) -> (i32, i32) {
    %c0_i32 = arith.constant 0 : i32
    %c0_i32_0 = arith.constant 0 : i32
    %c0_i32_1 = arith.constant 0 : i32
    return %c0_i32, %c0_i32_0 : i32, i32
  }
  func.func @transform_2(%arg0: i32) -> (i32, i32) {
    %c0_i32 = arith.constant 0 : i32
    %c0_i32_0 = arith.constant 0 : i32
    %c0_i32_1 = arith.constant 0 : i32
    return %c0_i32, %c0_i32_0 : i32, i32
  }
  func.func @transform_3(%arg0: i32) -> (i32, i32) {
    %c0_i32 = arith.constant 0 : i32
    %c0_i32_0 = arith.constant 0 : i32
    %c0_i32_1 = arith.constant 0 : i32
    return %c0_i32, %c0_i32_0 : i32, i32
  }
  func.func @transform_4(%arg0: i32) -> (i32, i32) {
    %c0_i32 = arith.constant 0 : i32
    %c0_i32_0 = arith.constant 0 : i32
    %c0_i32_1 = arith.constant 0 : i32
    return %c0_i32, %c0_i32_0 : i32, i32
  }
  func.func @transform_5(%arg0: i32) -> (i32, i32) {
    %c0_i32 = arith.constant 0 : i32
    %c0_i32_0 = arith.constant 0 : i32
    %c0_i32_1 = arith.constant 0 : i32
    return %c0_i32, %c0_i32_0 : i32, i32
  }
  func.func @transform_6(%arg0: i32) -> (i32, i32) {
    %c0_i32 = arith.constant 0 : i32
    %c0_i32_0 = arith.constant 0 : i32
    %c0_i32_1 = arith.constant 0 : i32
    return %c0_i32, %c0_i32_0 : i32, i32
  }
  func.func @transform_7(%arg0: i32) -> (i32, i32) {
    %c0_i32 = arith.constant 0 : i32
    %c0_i32_0 = arith.constant 0 : i32
    %c0_i32_1 = arith.constant 0 : i32
    return %c0_i32, %c0_i32_0 : i32, i32
  }
  func.func @transform_8(%arg0: i32) -> (i32, i32) {
    %c0_i32 = arith.constant 0 : i32
    %c0_i32_0 = arith.constant 0 : i32
    %c0_i32_1 = arith.constant 0 : i32
    return %c0_i32, %c0_i32_0 : i32, i32
  }
  func.func @transform_9(%arg0: i32) -> (i32, i32) {
    %c0_i32 = arith.constant 0 : i32
    %c0_i32_0 = arith.constant 0 : i32
    return %arg0, %c0_i32 : i32, i32
  }
}

</mosaic_0001>

<bundles_post_ra>
// kernel: tpu_custom_call.1
= control target key start
LH: loop header
LB: loop body
LE: loop exit
PB: predicated region body
PF: predicated region fallthrough
CT: control target
= control target key end

     0   :  { %s1793_s0 = inlined_call_operand.vmem [shape: f32[64,256], index: 0, kind: input, shape index: {}]   ;;  %s1794_s1 = inlined_call_operand.vmem [shape: bf16[256,16], index: 1, kind: input, shape index: {}]   ;;  %s1795_s2 = inlined_call_operand.vmem [shape: bf16[256,16], index: 2, kind: input, shape index: {}]   ;;  %s1796_s3 = inlined_call_operand.vmem [shape: bf16[16,64], index: 3, kind: input, shape index: {}]   ;;  %s1797_s4 = inlined_call_operand.vmem [shape: f32[16,1], index: 4, kind: input, shape index: {}]   ;;  %s1798_s5 = inlined_call_operand.vmem [shape: bf16[64,16], index: 5, kind: input, shape index: {}]   ;;  %s1799_s6 = inlined_call_operand.vmem [shape: bf16[64,16], index: 6, kind: input, shape index: {}]   ;;  %s1800_s7 = inlined_call_operand.vmem [shape: bf16[16,256], index: 7, kind: input, shape index: {}]   ;;  %s1801_s8 = inlined_call_operand.vmem [shape: bf16[16,256], index: 8, kind: input, shape index: {}]   ;;  %s1802_s9 = inlined_call_operand.hbm [shape: f32[64,256], index: 9, kind: output, shape index: {}]  }
   0x1   :  { %v1334_v0 = vld [vmem:[%s1794_s1 + $0x40] sm:$0xff]   ;;  %v1338_v4 = vld [vmem:[%s1794_s1 + $0x48] sm:$0xff]   ;;  %v1342_v8 = vld [vmem:[%s1794_s1 + $0x50] sm:$0xff]  }
   0x2   :  { %v1335_v1 = vld [vmem:[%s1795_s2 + $0x40] sm:$0xff]   ;;  %1183 = vmatprep.subr.bf16.mxu0 %v1334_v0  ;;  %v1339_v5 = vld [vmem:[%s1795_s2 + $0x48] sm:$0xff]   ;;  %v1343_v9 = vld [vmem:[%s1795_s2 + $0x50] sm:$0xff]  }
   0x3   :  { %v1336_v2 = vld [vmem:[%s1794_s1] sm:$0xff]   ;;  %1223 = vmatprep.subr.bf16.mxu1 %v1335_v1  ;;  %v1340_v6 = vld [vmem:[%s1794_s1 + $0x8] sm:$0xff]   ;;  %v1344_v10 = vld [vmem:[%s1794_s1 + $0x10] sm:$0xff]  }
   0x4   :  { %v1337_v3 = vld [vmem:[%s1795_s2] sm:$0xff]   ;;  %1184 = vmatpush3.bf16.msra.mxu0 %v1336_v2  ;;  %v1341_v7 = vld [vmem:[%s1795_s2 + $0x8] sm:$0xff]   ;;  %v1345_v11 = vld [vmem:[%s1795_s2 + $0x10] sm:$0xff]  }
   0x5   :  { %1224 = vmatpush3.bf16.msra.mxu1 %v1337_v3  ;;  %1185 = vmatprep.subr.bf16.mxu0 %v1338_v4  ;;  %v1346_v12 = vld [vmem:[%s1794_s1 + $0x58] sm:$0xff]   ;;  %v1350_v16 = vld [vmem:[%s1794_s1 + $0x60] sm:$0xff]   ;;  %v1354_v20 = vld [vmem:[%s1794_s1 + $0x68] sm:$0xff]  }
   0x6   :  { %1225 = vmatprep.subr.bf16.mxu1 %v1339_v5  ;;  %v1347_v13 = vld [vmem:[%s1795_s2 + $0x58] sm:$0xff]   ;;  %v1351_v17 = vld [vmem:[%s1795_s2 + $0x60] sm:$0xff]   ;;  %v1355_v21 = vld [vmem:[%s1795_s2 + $0x68] sm:$0xff]  }
   0x7   :  { %v1348_v14 = vld [vmem:[%s1794_s1 + $0x18] sm:$0xff]   ;;  %v1352_v18 = vld [vmem:[%s1794_s1 + $0x20] sm:$0xff]   ;;  %v1356_v22 = vld [vmem:[%s1794_s1 + $0x28] sm:$0xff]  }
   0x8   :  { %1186 = vmatpush3.bf16.msra.mxu0 %v1340_v6  ;;  %v1349_v15 = vld [vmem:[%s1795_s2 + $0x18] sm:$0xff]   ;;  %v1353_v19 = vld [vmem:[%s1795_s2 + $0x20] sm:$0xff]   ;;  %v1357_v23 = vld [vmem:[%s1795_s2 + $0x28] sm:$0xff]  }
   0x9   :  { %1226 = vmatpush3.bf16.msra.mxu1 %v1341_v7  ;;  %1187 = vmatprep.subr.bf16.mxu0 %v1342_v8  ;;  %v1358_v24 = vld [vmem:[%s1794_s1 + $0x70] sm:$0xff]   ;;  %v1362_v28 = vld [vmem:[%s1794_s1 + $0x78] sm:$0xff]   ;;  %v1592_v32 = vld [vmem:[%s1793_s0 + $0x8] sm:$0xff] }
   0xa   :  { %1227 = vmatprep.subr.bf16.mxu1 %v1343_v9  ;;  %v1359_v25 = vld [vmem:[%s1795_s2 + $0x70] sm:$0xff]   ;;  %v1363_v29 = vld [vmem:[%s1795_s2 + $0x78] sm:$0xff]   ;;  %v1602_v34 = vld [vmem:[%s1793_s0] sm:$0xff] }
   0xb   :  { %v1360_v26 = vld [vmem:[%s1794_s1 + $0x30] sm:$0xff]   ;;  %v1364_v30 = vld [vmem:[%s1794_s1 + $0x38] sm:$0xff]   ;;  %v1614_v37 = vld [vmem:[%s1793_s0 + $0x28] sm:$0xff] }
   0xc   :  { %1188 = vmatpush3.bf16.msra.mxu0 %v1344_v10  ;;  %v1361_v27 = vld [vmem:[%s1795_s2 + $0x30] sm:$0xff]   ;;  %v1365_v31 = vld [vmem:[%s1795_s2 + $0x38] sm:$0xff]   ;;  %v1628_v41 = vld [vmem:[%s1793_s0 + $0x20] sm:$0xff] }
   0xd   :  { %1228 = vmatpush3.bf16.msra.mxu1 %v1345_v11  ;;  %1189 = vmatprep.subr.bf16.mxu0 %v1346_v12  ;;  %v1597_v33 = vld [vmem:[%s1793_s0 + $0x18] sm:$0xff]  ;;  %v1609_v36 = vld [vmem:[%s1793_s0 + $0x10] sm:$0xff]  ;;  %v1638_v43 = vld [vmem:[%s1793_s0 + $0x48] sm:$0xff] }
   0xe   :  { %1229 = vmatprep.subr.bf16.mxu1 %v1347_v13  ;;  %v51_v35 = vpack.c.bf16 %v1597_v33, %v1592_v32  ;;  %v1619_v38 = vld [vmem:[%s1793_s0 + $0x38] sm:$0xff]  ;;  %v50_v39 = vpack.c.bf16 %v1609_v36, %v1602_v34  ;;  %v1633_v42 = vld [vmem:[%s1793_s0 + $0x30] sm:$0xff] }
   0xf   :  { %v53_v40 = vpack.c.bf16 %v1619_v38, %v1614_v37  ;;  %v1643_v44 = vld [vmem:[%s1793_s0 + $0x58] sm:$0xff]  ;;  %v52_v45 = vpack.c.bf16 %v1633_v42, %v1628_v41 }
  0x10   :  { %1190 = vmatpush3.bf16.msra.mxu0 %v1348_v14  ;;  %218 = vmatprep.mubr.bf16.mxu0 %v51_v35  ;;  %v55_v46 = vpack.c.bf16 %v1643_v44, %v1638_v43 }
  0x11   :  { %1230 = vmatpush3.bf16.msra.mxu1 %v1349_v15  ;;  %1191 = vmatprep.subr.bf16.mxu0 %v1350_v16 }
  0x12   :  { %1231 = vmatprep.subr.bf16.mxu1 %v1351_v17  ;;  %419 = vmatprep.mubr.bf16.mxu1 %v51_v35 }
  0x14   :  { %1192 = vmatpush3.bf16.msra.mxu0 %v1352_v18 }
  0x15   :  { %1232 = vmatpush3.bf16.msra.mxu1 %v1353_v19  ;;  %1193 = vmatprep.subr.bf16.mxu0 %v1354_v20 }
  0x16   :  { %1233 = vmatprep.subr.bf16.mxu1 %v1355_v21 }
  0x18   :  { %1194 = vmatpush3.bf16.msra.mxu0 %v1356_v22 }
  0x19   :  { %1234 = vmatpush3.bf16.msra.mxu1 %v1357_v23  ;;  %1195 = vmatprep.subr.bf16.mxu0 %v1358_v24 }
  0x1a   :  { %1235 = vmatprep.subr.bf16.mxu1 %v1359_v25 }
  0x1c   :  { %1196 = vmatpush3.bf16.msra.mxu0 %v1360_v26 }
  0x1d   :  { %1236 = vmatpush3.bf16.msra.mxu1 %v1361_v27  ;;  %1197 = vmatprep.subr.bf16.mxu0 %v1362_v28 }
  0x1e   :  { %1237 = vmatprep.subr.bf16.mxu1 %v1363_v29 }
  0x20   :  { %1198 = vmatpush3.bf16.msra.mxu0 %v1364_v30 }
  0x21   :  { %1238 = vmatpush3.bf16.msra.mxu1 %v1365_v31 }
  0x23   :  { %219 = vmatmul.mubr.bf16.vlgmr.msra.gmra.mrb[0].mxu0 %v50_v39 }
  0x24   :  { %420 = vmatmul.mubr.bf16.vlgmr.msra.gmra.mrb[0].mxu1 %v50_v39  ;;  %226 = vmatprep.mubr.bf16.mxu0 %v53_v40 }
  0x25   :  { %427 = vmatprep.mubr.bf16.mxu1 %v53_v40 }
  0x2b   :  { %227 = vmatmul.mubr.bf16.gmra.mrb[4].mxu0 %v52_v45 }
  0x2c   :  { %428 = vmatmul.mubr.bf16.gmra.mrb[4].mxu1 %v52_v45 }
  0x2d   :  { %14 = vsyncpa [#allocation3], 0  ;;  %234 = vmatprep.mubr.bf16.mxu0 %v55_v46  ;;  %435 = vmatprep.mubr.bf16.mxu1 %v55_v46  ;;  %v1652_v47 = vld [vmem:[%s1793_s0 + $0x40] sm:$0xff]  ;;  %v1657_v48 = vld [vmem:[%s1793_s0 + $0x50] sm:$0xff]  ;;  %v1437_v56 = vmov 0.0   ;;  %vm1438_vm0 = vmmov 0  }
  0x2e   :  { %v1662_v49 = vld [vmem:[%s1793_s0 + $0x68] sm:$0xff]  ;;  %v1667_v50 = vld [vmem:[%s1793_s0 + $0x78] sm:$0xff]  ;;  %v54_v51 = vpack.c.bf16 %v1657_v48, %v1652_v47  ;;  %v1676_v53 = vld [vmem:[%s1793_s0 + $0x60] sm:$0xff]  ;;  %1283 = vmatprep.subr.bf16.mxu0 %v1437_v56  ;;  %1295 = vmatprep.subr.bf16.mxu1 %v1437_v56  ;;  %v1439_v58 = vmov 0   ;;  %vm483_vm1 = vcmask 523264   ;;  %vm606_vm2 = vcmask 130048  }
  0x2f   :  { %v57_v52 = vpack.c.bf16 %v1667_v50, %v1662_v49  ;;  %v1681_v54 = vld [vmem:[%s1793_s0 + $0x70] sm:$0xff]  ;;  %v462_v57 = vld [vmem:[%s1797_s4] sm:$0xff]  ;;  %1333 = vset.pattern.permute.xlu0 %v1439_v58  ;;  %v463_v59 = vld [vmem:[%s1797_s4 + $0x8] sm:$0xff] }
  0x30   :  { %v56_v55 = vpack.c.bf16 %v1681_v54, %v1676_v53  ;;  %470 = vperm.xlu0 %1333, %v462_v57  }
  0x33   :  { %235 = vmatmul.mubr.bf16.gmra.mrb[8].mxu0 %v54_v51 }
  0x34   :  { %436 = vmatmul.mubr.bf16.gmra.mrb[8].mxu1 %v54_v51  ;;  %242 = vmatprep.mubr.bf16.mxu0 %v57_v52 }
  0x35   :  { %443 = vmatprep.mubr.bf16.mxu1 %v57_v52  ;;  %475 = vperm.xlu0 %1333, %v463_v59  }
  0x3b   :  { %243 = vmatmul.mubr.bf16.gmra.mrb[12].mxu0 %v56_v55 }
  0x3c   :  { %444 = vmatmul.mubr.bf16.gmra.mrb[12].mxu1 %v56_v55  ;;  %1291 = vmatprep.mubr.msk.bf16.mxu0 %vm1438_vm0, %v1437_v56 }
  0x3d   :  { %1303 = vmatprep.mubr.msk.bf16.mxu1 %vm1438_vm0, %v1437_v56 }
  0xf6   :  { %v1199_v60 = vpop.f32.mrb[0].mxu0 }
  0xf7   :  { %v1239_v61 = vpop.f32.mrb[0].mxu1  ;;  %v1200_v62 = vpop.f32.mrb[1].mxu0 }
  0xf8   :  { %v1240_v63 = vpop.f32.mrb[1].mxu1  ;;  %v1201_v0 = vadd.f32 %v1200_v62, %v1199_v60  ;;  %v1202_v2 = vpop.f32.mrb[2].mxu0 }
  0xf9   :  { %v1241_v1 = vadd.f32 %v1240_v63, %v1239_v61  ;;  %v1242_v3 = vpop.f32.mrb[2].mxu1  ;;  %v1203_v4 = vpop.f32.mrb[3].mxu0 }
  0xfa   :  { %v1243_v5 = vpop.f32.mrb[3].mxu1  ;;  %v1204_v7 = vadd.f32 %v1203_v4, %v1202_v2  ;;  %v251_v9 = vmul.f32 0.0625, %v1201_v0 }
  0xfb   :  { %v452_v6 = vmul.f32 0.0625, %v1241_v1  ;;  %v1244_v8 = vadd.f32 %v1243_v5, %v1242_v3 }
  0xfc   :  { %v252_v10 = vmul.f32 0.0625, %v1204_v7 }
  0xfd   :  { %v453_v11 = vmul.f32 0.0625, %v1244_v8 }
  0xfe   :  { %v464_v12 = vpack.c.bf16 %v252_v10, %v251_v9  ;;  %v1205_v14 = vpop.f32.mrb[4].mxu0 }
  0xff   :  { %v530_v13 = vpack.c.bf16 %v453_v11, %v452_v6  ;;  %v1245_v15 = vpop.f32.mrb[4].mxu1  ;;  %v1206_v16 = vpop.f32.mrb[5].mxu0 }
 0x100   :  { %v1246_v17 = vpop.f32.mrb[5].mxu1  ;;  %v1207_v18 = vadd.f32 %v1206_v16, %v1205_v14  ;;  %v1208_v20 = vpop.f32.mrb[6].mxu0  ;;  %1284 = vmatpush3.bf16.msra.mxu0 %v464_v12 }
 0x101   :  { %v1247_v19 = vadd.f32 %v1246_v17, %v1245_v15  ;;  %v1248_v21 = vpop.f32.mrb[6].mxu1  ;;  %1296 = vmatpush3.bf16.msra.mxu1 %v530_v13  ;;  %v1209_v22 = vpop.f32.mrb[7].mxu0  ;;  %1285 = vmatprep.subr.bf16.mxu0 %v1437_v56 }
 0x102   :  { %v1249_v23 = vpop.f32.mrb[7].mxu1  ;;  %1297 = vmatprep.subr.bf16.mxu1 %v1437_v56  ;;  %v1210_v25 = vadd.f32 %v1209_v22, %v1208_v20  ;;  %v253_v27 = vmul.f32 0.0625, %v1207_v18  ;;  %v1366_v22 = vld [vmem:[%s1796_s3] sm:$0xff]  }
 0x103   :  { %v454_v24 = vmul.f32 0.0625, %v1247_v19  ;;  %v1250_v26 = vadd.f32 %v1249_v23, %v1248_v21  ;;  %v1368_v23 = vld [vmem:[%s1799_s6] sm:$0xff]  }
 0x104   :  { %v254_v28 = vmul.f32 0.0625, %v1210_v25 }
 0x105   :  { %v455_v29 = vmul.f32 0.0625, %v1250_v26 }
 0x106   :  { %v465_v30 = vpack.c.bf16 %v254_v28, %v253_v27  ;;  %v1211_v35 = vpop.f32.mrb[8].mxu0 }
 0x107   :  { %v531_v31 = vpack.c.bf16 %v455_v29, %v454_v24  ;;  %v1251_v39 = vpop.f32.mrb[8].mxu1  ;;  %v1212_v40 = vpop.f32.mrb[9].mxu0 }
 0x108   :  { %v1252_v45 = vpop.f32.mrb[9].mxu1  ;;  %v1213_v46 = vadd.f32 %v1212_v40, %v1211_v35  ;;  %v1214_v52 = vpop.f32.mrb[10].mxu0  ;;  %1286 = vmatpush3.bf16.msra.mxu0 %v465_v30 }
 0x109   :  { %v1253_v51 = vadd.f32 %v1252_v45, %v1251_v39  ;;  %v1254_v55 = vpop.f32.mrb[10].mxu1  ;;  %1298 = vmatpush3.bf16.msra.mxu1 %v531_v31  ;;  %v1215_v57 = vpop.f32.mrb[11].mxu0  ;;  %1287 = vmatprep.subr.bf16.mxu0 %v1437_v56 }
 0x10a   :  { %v1255_v59 = vpop.f32.mrb[11].mxu1  ;;  %1299 = vmatprep.subr.bf16.mxu1 %v1437_v56  ;;  %v1216_v61 = vadd.f32 %v1215_v57, %v1214_v52  ;;  %v255_v63 = vmul.f32 0.0625, %v1213_v46  ;;  %v471_v24 = vpop.permute.xlu0 %470 }
 0x10b   :  { %v456_v60 = vmul.f32 0.0625, %v1253_v51  ;;  %v1256_v62 = vadd.f32 %v1255_v59, %v1254_v55 }
 0x10c   :  { %v256_v0 = vmul.f32 0.0625, %v1216_v61 }
 0x10d   :  { %v457_v1 = vmul.f32 0.0625, %v1256_v62  ;;  %v1369_v62 = vld [vmem:[%s1798_s5 + $0x8] sm:$0xff]  }
 0x10e   :  { %v466_v2 = vpack.c.bf16 %v256_v0, %v255_v63  ;;  %v1217_v4 = vpop.f32.mrb[12].mxu0  ;;  %v476_v25 = vpop.permute.xlu0 %475  ;;  %v1370_v63 = vld [vmem:[%s1799_s6 + $0x8] sm:$0xff]   ;;  %v1371_v0 = vld [vmem:[%s1798_s5 + $0x10] sm:$0xff]  }
 0x10f   :  { %v532_v3 = vpack.c.bf16 %v457_v1, %v456_v60  ;;  %v1257_v5 = vpop.f32.mrb[12].mxu1  ;;  %v1218_v6 = vpop.f32.mrb[13].mxu0  ;;  %v1372_v1 = vld [vmem:[%s1799_s6 + $0x10] sm:$0xff]  }
 0x110   :  { %v1258_v7 = vpop.f32.mrb[13].mxu1  ;;  %v1219_v8 = vadd.f32 %v1218_v6, %v1217_v4  ;;  %v1220_v10 = vpop.f32.mrb[14].mxu0  ;;  %1288 = vmatpush3.bf16.msra.mxu0 %v466_v2  ;;  %v1373_v2 = vld [vmem:[%s1798_s5 + $0x18] sm:$0xff]   ;;  %v1377_v4 = vld [vmem:[%s1800_s7 + $0x4] ss:$8 sps:$4 sm:$0xff]  }
 0x111   :  { %v1259_v9 = vadd.f32 %v1258_v7, %v1257_v5  ;;  %v1260_v11 = vpop.f32.mrb[14].mxu1  ;;  %1300 = vmatpush3.bf16.msra.mxu1 %v532_v3  ;;  %v1221_v12 = vpop.f32.mrb[15].mxu0  ;;  %1289 = vmatprep.subr.bf16.mxu0 %v1437_v56  ;;  %v1374_v3 = vld [vmem:[%s1799_s6 + $0x18] sm:$0xff]   ;;  %v1380_v5 = vld [vmem:[%s1801_s8 + $0x4] ss:$8 sps:$4 sm:$0xff]  }
 0x112   :  { %v1261_v13 = vpop.f32.mrb[15].mxu1  ;;  %1301 = vmatprep.subr.bf16.mxu1 %v1437_v56  ;;  %v1222_v15 = vadd.f32 %v1221_v12, %v1220_v10  ;;  %v257_v17 = vmul.f32 0.0625, %v1219_v8  ;;  %v1367_v56 = vld [vmem:[%s1798_s5] sm:$0xff]  }
 0x113   :  { %v458_v14 = vmul.f32 0.0625, %v1259_v9  ;;  %v1262_v16 = vadd.f32 %v1261_v13, %v1260_v11  ;;  %v1375_v6 = vld [vmem:[%s1800_s7] ss:$8 sps:$4 sm:$0xff]   ;;  %s1440_s7 = smov [#allocation2]  }
 0x114   :  { %v258_v18 = vmul.f32 0.0625, %v1222_v15  ;;  %v1378_v7 = vld [vmem:[%s1801_s8] ss:$8 sps:$4 sm:$0xff]   ;;  %s1109_s8 = sshll.u32 %s1440_s7, 4  ;;  %s1110_s8 = int_to_ptr.vmem [resolvable:$true] %s1109_s8 }
 0x115   :  { %v459_v19 = vmul.f32 0.0625, %v1262_v16  ;;  %s1413_s0 = scalar_lea.vmem %s1110_s8, 2048  ;;  %p1418_p1 = scmp.lt.s32.totalorder %s1110_s8, %s1110_s8 }
 0x116   :  { %v467_v20 = vpack.c.bf16 %v258_v18, %v257_v17  ;;  %p1414_p0 = scmp.ne.s32.totalorder %s1110_s8, %s1413_s0  ;;  %p1419_p2 = scmp.lt.s32.totalorder %s1413_s0, %s1413_s0 }
 0x117   :  { %v533_v21 = vpack.c.bf16 %v459_v19, %v458_v14 }
 0x118   :  { %1290 = vmatpush3.bf16.msra.mxu0 %v467_v20  ;;  %p1420_p3 = por %p1419_p2, %p1418_p1 }
 0x119   :  { %1302 = vmatpush3.bf16.msra.mxu1 %v533_v21 }
 0x11a   :  { %p1421_p4 = pnand %p1420_p3, %p1414_p0 }
 0x11b   :  { %1292 = vmatmul.mubr.msk.bf16.vlgmr.msra.gmra.mrb[16].mxu0 %vm483_vm1, %v1366_v22 }
 0x11c   :  { %1304 = vmatmul.mubr.msk.bf16.vlgmr.msra.gmra.mrb[16].mxu1 %vm483_vm1, %v1366_v22  ;;  %1309 = vmatprep.mubr.msk.bf16.mxu0 %vm606_vm2, %v1367_v56 }
 0x11d   :  { %1319 = vmatprep.mubr.msk.bf16.mxu1 %vm606_vm2, %v1368_v23 }
 0x1ee   :  { %v521_v26 = vpop.f32.mrb[16].mxu0 }
 0x1ef   :  { %v568_v27 = vpop.f32.mrb[16].mxu1  ;;  %v522_v28 = vadd.f32 %v521_v26, %v471_v24  ;;  %v1293_v30 = vpop.f32.mrb[17].mxu0 }
 0x1f0   :  { %v569_v29 = vadd.f32 %v568_v27, %v471_v24  ;;  %v1305_v31 = vpop.f32.mrb[17].mxu1  ;;  %v524_v35 = vpop.f32.mrb[18].mxu0 }
 0x1f1   :  { %v571_v39 = vpop.f32.mrb[18].mxu1  ;;  %v525_v40 = vadd.f32 %v524_v35, %v476_v25  ;;  %v1294_v46 = vpop.f32.mrb[19].mxu0  ;;  %v528_v52 = vmax.f32 %v522_v28, 0.0 }
 0x1f2   :  { %v572_v45 = vadd.f32 %v571_v39, %v476_v25  ;;  %v1306_v51 = vpop.f32.mrb[19].mxu1  ;;  %v575_v55 = vmax.f32 %v569_v29, 0.0 }
 0x1f3   :  { %v529_v57 = vmax.f32 %v525_v40, 0.0 }
 0x1f4   :  { %v576_v59 = vmax.f32 %v572_v45, 0.0 }
 0x1f5   :  { %v585_v60 = vpack.c.bf16 %v529_v57, %v528_v52 }
 0x1f6   :  { %v724_v61 = vpack.c.bf16 %v576_v59, %v575_v55 }
 0x1f7   :  { %1307 = vmatprep.subr.bf16.mxu0 %v585_v60 }
 0x1f8   :  { %1317 = vmatprep.subr.bf16.mxu1 %v724_v61  ;;  %1308 = vmatpush3.bf16.msra.mxu0 %v585_v60 }
 0x1f9   :  { %1318 = vmatpush3.bf16.msra.mxu1 %v724_v61  ;;  %882 = vmatprep.subr.bf16.mxu0 %v1377_v4 }
 0x1fa   :  { %983 = vmatprep.subr.bf16.mxu1 %v1380_v5 }
 0x1fb   :  { %1310 = vmatmul.mubr.msk.bf16.vlgmr.msra.gmra.mrb[20].mxu0 %vm606_vm2, %v1369_v62 }
 0x1fc   :  { %1320 = vmatmul.mubr.msk.bf16.vlgmr.msra.gmra.mrb[20].mxu1 %vm606_vm2, %v1370_v63  ;;  %1313 = vmatprep.mubr.msk.bf16.mxu0 %vm606_vm2, %v1371_v0 }
 0x1fd   :  { %1323 = vmatprep.mubr.msk.bf16.mxu1 %vm606_vm2, %v1372_v1  ;;  %883 = vmatpush1.bf16.msra.mxu0 %v1375_v6 }
 0x1fe   :  { %984 = vmatpush1.bf16.msra.mxu1 %v1378_v7 }
 0x203   :  { %1314 = vmatmul.mubr.msk.bf16.gmra.mrb[24].mxu0 %vm606_vm2, %v1373_v2 }
 0x204   :  { %1324 = vmatmul.mubr.msk.bf16.gmra.mrb[24].mxu1 %vm606_vm2, %v1374_v3  ;;  %914 = vmatprep.mubr.bf16.mxu0 %v1439_v58 }
 0x205   :  { %1015 = vmatprep.mubr.bf16.mxu1 %v1439_v58 }
 0x2ce   :  { %v1311_v8 = vpop.f32.mrb[20].mxu0 }
 0x2cf   :  { %v1321_v9 = vpop.f32.mrb[20].mxu1  ;;  %v686_v10 = vmul.f32 0.5, %v1311_v8  ;;  %v653_v12 = vpop.f32.mrb[21].mxu0 }
 0x2d0   :  { %v824_v11 = vmul.f32 0.5, %v1321_v9  ;;  %v791_v13 = vpop.f32.mrb[21].mxu1  ;;  %v684_v14 = vmul.f32 0.5, %v653_v12  ;;  %v1312_v16 = vpop.f32.mrb[22].mxu0 }
 0x2d1   :  { %v822_v15 = vmul.f32 0.5, %v791_v13  ;;  %v1322_v17 = vpop.f32.mrb[22].mxu1  ;;  %1381 = vtanh.f32 %v686_v10  ;;  %v687_v18 = vmul.f32 0.5, %v1312_v16  ;;  %v656_v19 = vpop.f32.mrb[23].mxu0 }
 0x2d2   :  { %v794_v20 = vpop.f32.mrb[23].mxu1  ;;  %1383 = vtanh.f32 %v824_v11  ;;  %v825_v21 = vmul.f32 0.5, %v1322_v17  ;;  %v685_v22 = vmul.f32 0.5, %v656_v19 }
 0x2d3   :  { %1385 = vtanh.f32 %v684_v14  ;;  %v823_v56 = vmul.f32 0.5, %v794_v20 }
 0x2d4   :  { %1387 = vtanh.f32 %v822_v15 }
 0x2d5   :  { %1389 = vtanh.f32 %v687_v18 }
 0x2d6   :  { %1391 = vtanh.f32 %v825_v21  ;;  %v1315_v23 = vpop.f32.mrb[24].mxu0 }
 0x2d7   :  { %v1325_v24 = vpop.f32.mrb[24].mxu1  ;;  %1393 = vtanh.f32 %v685_v22  ;;  %v690_v25 = vmul.f32 0.5, %v1315_v23  ;;  %v669_v27 = vpop.f32.mrb[25].mxu0 }
 0x2d8   :  { %v828_v26 = vmul.f32 0.5, %v1325_v24  ;;  %v807_v28 = vpop.f32.mrb[25].mxu1  ;;  %1395 = vtanh.f32 %v823_v56  ;;  %v688_v29 = vmul.f32 0.5, %v669_v27  ;;  %v1316_v31 = vpop.f32.mrb[26].mxu0 }
 0x2d9   :  { %v826_v30 = vmul.f32 0.5, %v807_v28  ;;  %v1326_v35 = vpop.f32.mrb[26].mxu1  ;;  %1397 = vtanh.f32 %v690_v25  ;;  %v691_v39 = vmul.f32 0.5, %v1316_v31  ;;  %v672_v40 = vpop.f32.mrb[27].mxu0 }
 0x2da   :  { %v810_v45 = vpop.f32.mrb[27].mxu1  ;;  %1399 = vtanh.f32 %v828_v26  ;;  %v829_v46 = vmul.f32 0.5, %v1326_v35  ;;  %v689_v52 = vmul.f32 0.5, %v672_v40 }
 0x2db   :  { %v1382_v51 = vpop.eup %1381  ;;  %1401 = vtanh.f32 %v688_v29  ;;  %v827_v57 = vmul.f32 0.5, %v810_v45 }
 0x2dc   :  { %v1384_v55 = vpop.eup %1383  ;;  %1403 = vtanh.f32 %v826_v30  ;;  %v702_v62 = vmul.f32 0.5, %v1382_v51 }
 0x2dd   :  { %v1386_v59 = vpop.eup %1385  ;;  %v840_v60 = vmul.f32 0.5, %v1384_v55  ;;  %1405 = vtanh.f32 %v691_v39 }
 0x2de   :  { %v1388_v61 = vpop.eup %1387  ;;  %1407 = vtanh.f32 %v829_v46  ;;  %v700_v2 = vmul.f32 0.5, %v1386_v59  ;;  %v710_v8 = vadd.f32 0.5, %v702_v62 }
 0x2df   :  { %v1390_v63 = vpop.eup %1389  ;;  %v838_v0 = vmul.f32 0.5, %v1388_v61  ;;  %1409 = vtanh.f32 %v689_v52  ;;  %v848_v5 = vadd.f32 0.5, %v840_v60 }
 0x2e0   :  { %v1392_v1 = vpop.eup %1391  ;;  %v703_v3 = vmul.f32 0.5, %v1390_v63  ;;  %1411 = vtanh.f32 %v827_v57  ;;  %v708_v16 = vadd.f32 0.5, %v700_v2 }
 0x2e1   :  { %v1394_v4 = vpop.eup %1393  ;;  %v841_v6 = vmul.f32 0.5, %v1392_v1  ;;  %v846_v12 = vadd.f32 0.5, %v838_v0 }
 0x2e2   :  { %v1396_v7 = vpop.eup %1395  ;;  %v711_v9 = vadd.f32 0.5, %v703_v3  ;;  %v701_v10 = vmul.f32 0.5, %v1394_v4 }
 0x2e3   :  { %v1398_v11 = vpop.eup %1397  ;;  %v849_v13 = vadd.f32 0.5, %v841_v6  ;;  %v839_v14 = vmul.f32 0.5, %v1396_v7 }
 0x2e4   :  { %v1400_v15 = vpop.eup %1399  ;;  %v855_v17 = vpack.c.bf16 %v711_v9, %v710_v8  ;;  %v709_v18 = vadd.f32 0.5, %v701_v10  ;;  %v706_v19 = vmul.f32 0.5, %v1398_v11 }
 0x2e5   :  { %v1402_v20 = vpop.eup %1401  ;;  %v956_v21 = vpack.c.bf16 %v849_v13, %v848_v5  ;;  %v847_v22 = vadd.f32 0.5, %v839_v14  ;;  %v844_v56 = vmul.f32 0.5, %v1400_v15 }
 0x2e6   :  { %v1404_v23 = vpop.eup %1403  ;;  %v854_v24 = vpack.c.bf16 %v709_v18, %v708_v16  ;;  %v704_v25 = vmul.f32 0.5, %v1402_v20  ;;  %v714_v30 = vadd.f32 0.5, %v706_v19 }
 0x2e7   :  { %v1406_v26 = vpop.eup %1405  ;;  %v955_v27 = vpack.c.bf16 %v847_v22, %v846_v12  ;;  %v842_v28 = vmul.f32 0.5, %v1404_v23  ;;  %v852_v39 = vadd.f32 0.5, %v844_v56 }
 0x2e8   :  { %v1408_v29 = vpop.eup %1407  ;;  %v707_v31 = vmul.f32 0.5, %v1406_v26  ;;  %1173 = vmatmul.mubr.msk.bf16.vlgmr.msra.gmra.mrb[28].mxu0 %vm606_vm2, %v854_v24  ;;  %v712_v46 = vadd.f32 0.5, %v704_v25 }
 0x2e9   :  { %v1410_v35 = vpop.eup %1409  ;;  %v845_v40 = vmul.f32 0.5, %v1408_v29  ;;  %1179 = vmatmul.mubr.msk.bf16.vlgmr.msra.gmra.mrb[28].mxu1 %vm606_vm2, %v955_v27  ;;  %924 = vmatprep.mubr.bf16.mxu0 %v1439_v58  ;;  %v850_v55 = vadd.f32 0.5, %v842_v28 }
 0x2ea   :  { %v1412_v45 = vpop.eup %1411  ;;  %v715_v51 = vadd.f32 0.5, %v707_v31  ;;  %v705_v52 = vmul.f32 0.5, %v1410_v35  ;;  %1025 = vmatprep.mubr.bf16.mxu1 %v1439_v58 }
 0x2eb   :  { %v853_v57 = vadd.f32 0.5, %v845_v40  ;;  %v843_v59 = vmul.f32 0.5, %v1412_v45 }
 0x2ec   :  { %v857_v60 = vpack.c.bf16 %v715_v51, %v714_v30  ;;  %v713_v61 = vadd.f32 0.5, %v705_v52 }
 0x2ed   :  { %v958_v62 = vpack.c.bf16 %v853_v57, %v852_v39  ;;  %v851_v63 = vadd.f32 0.5, %v843_v59 }
 0x2ee   :  { %v856_v0 = vpack.c.bf16 %v713_v61, %v712_v46 }
 0x2ef   :  { %v957_v1 = vpack.c.bf16 %v851_v63, %v850_v55 }
 0x2f0   :  { %1174 = vmatmul.mubr.msk.bf16.gmra.mrb[32].mxu0 %vm606_vm2, %v855_v17 }
 0x2f1   :  { %1180 = vmatmul.mubr.msk.bf16.gmra.mrb[32].mxu1 %vm606_vm2, %v956_v21  ;;  %934 = vmatprep.mubr.bf16.mxu0 %v1439_v58 }
 0x2f2   :  { %1035 = vmatprep.mubr.bf16.mxu1 %v1439_v58 }
 0x2f8   :  { %1175 = vmatmul.mubr.msk.bf16.gmra.mrb[36].mxu0 %vm606_vm2, %v856_v0 }
 0x2f9   :  { %1181 = vmatmul.mubr.msk.bf16.gmra.mrb[36].mxu1 %vm606_vm2, %v957_v1  ;;  %944 = vmatprep.mubr.bf16.mxu0 %v1439_v58 }
 0x2fa   :  { %1045 = vmatprep.mubr.bf16.mxu1 %v1439_v58 }
 0x300   :  { %1176 = vmatmul.mubr.msk.bf16.gmra.mrb[40].mxu0 %vm606_vm2, %v857_v60 }
 0x301   :  { %1182 = vmatmul.mubr.msk.bf16.gmra.mrb[40].mxu1 %vm606_vm2, %v958_v62 }
 0x3bb   :  { %v916_v2 = vpop.f32.mrb[28].mxu0 }
 0x3bc   :  { %v1056_v3 = vmul.f32 %v916_v2, %v1602_v34  ;;  %v918_v4 = vpop.f32.mrb[29].mxu0  ;;  %v1017_v5 = vpop.f32.mrb[28].mxu1 }
 0x3bd   :  { %v1057_v6 = vmul.f32 %v918_v4, %v1592_v32  ;;  %v920_v7 = vpop.f32.mrb[30].mxu0  ;;  %v1019_v8 = vpop.f32.mrb[29].mxu1 }
 0x3be   :  { %v1072_v9 = vmul.f32 %v1056_v3, %v1017_v5  ;;  %v1058_v10 = vmul.f32 %v920_v7, %v1609_v36  ;;  %v922_v11 = vpop.f32.mrb[31].mxu0  ;;  %v1021_v12 = vpop.f32.mrb[30].mxu1 }
 0x3bf   :  { %v1073_v13 = vmul.f32 %v1057_v6, %v1019_v8  ;;  %v1059_v58 = vmul.f32 %v922_v11, %v1597_v33  ;;  %v1023_v14 = vpop.f32.mrb[31].mxu1 }
 0x3c0   :  { %1088 = vst [vmem:[#allocation2] sm:$0xff] %v1072_v9  ;;  %v1074_v15 = vmul.f32 %v1058_v10, %v1021_v12 }
 0x3c1   :  { %1089 = vst [vmem:[#allocation2 + $0x8] sm:$0xff] %v1073_v13  ;;  %v1075_v16 = vmul.f32 %v1059_v58, %v1023_v14 }
 0x3c2   :  { %1090 = vst [vmem:[#allocation2 + $0x10] sm:$0xff] %v1074_v15 }
 0x3c3   :  { %1091 = vst [vmem:[#allocation2 + $0x18] sm:$0xff] %v1075_v16  ;;  %v926_v34 = vpop.f32.mrb[32].mxu0 }
 0x3c4   :  { %v1060_v32 = vmul.f32 %v926_v34, %v1628_v41  ;;  %v1027_v17 = vpop.f32.mrb[32].mxu1  ;;  %v928_v18 = vpop.f32.mrb[33].mxu0 }
 0x3c5   :  { %v1061_v19 = vmul.f32 %v928_v18, %v1614_v37  ;;  %v1029_v36 = vpop.f32.mrb[33].mxu1  ;;  %v930_v20 = vpop.f32.mrb[34].mxu0 }
 0x3c6   :  { %v1076_v21 = vmul.f32 %v1060_v32, %v1027_v17  ;;  %v1062_v22 = vmul.f32 %v930_v20, %v1633_v42  ;;  %v1031_v33 = vpop.f32.mrb[34].mxu1  ;;  %v932_v56 = vpop.f32.mrb[35].mxu0 }
 0x3c7   :  { %v1077_v23 = vmul.f32 %v1061_v19, %v1029_v36  ;;  %v1063_v24 = vmul.f32 %v932_v56, %v1619_v38  ;;  %v1033_v25 = vpop.f32.mrb[35].mxu1 }
 0x3c8   :  { %1092 = vst [vmem:[#allocation2 + $0x20] sm:$0xff] %v1076_v21  ;;  %v1078_v26 = vmul.f32 %v1062_v22, %v1031_v33 }
 0x3c9   :  { %1093 = vst [vmem:[#allocation2 + $0x28] sm:$0xff] %v1077_v23  ;;  %v1079_v27 = vmul.f32 %v1063_v24, %v1033_v25 }
 0x3ca   :  { %1094 = vst [vmem:[#allocation2 + $0x30] sm:$0xff] %v1078_v26 }
 0x3cb   :  { %1095 = vst [vmem:[#allocation2 + $0x38] sm:$0xff] %v1079_v27  ;;  %v936_v41 = vpop.f32.mrb[36].mxu0 }
 0x3cc   :  { %v1064_v37 = vmul.f32 %v936_v41, %v1652_v47  ;;  %v938_v28 = vpop.f32.mrb[37].mxu0  ;;  %v1037_v29 = vpop.f32.mrb[36].mxu1 }
 0x3cd   :  { %v1065_v30 = vmul.f32 %v938_v28, %v1638_v43  ;;  %v940_v42 = vpop.f32.mrb[38].mxu0  ;;  %v1039_v31 = vpop.f32.mrb[37].mxu1 }
 0x3ce   :  { %v1080_v35 = vmul.f32 %v1064_v37, %v1037_v29  ;;  %v1066_v39 = vmul.f32 %v940_v42, %v1657_v48  ;;  %v942_v38 = vpop.f32.mrb[39].mxu0  ;;  %v1041_v40 = vpop.f32.mrb[38].mxu1 }
 0x3cf   :  { %v1081_v45 = vmul.f32 %v1065_v30, %v1039_v31  ;;  %v1067_v46 = vmul.f32 %v942_v38, %v1643_v44  ;;  %v1043_v51 = vpop.f32.mrb[39].mxu1 }
 0x3d0   :  { %1096 = vst [vmem:[#allocation2 + $0x40] sm:$0xff] %v1080_v35  ;;  %v1082_v52 = vmul.f32 %v1066_v39, %v1041_v40 }
 0x3d1   :  { %1097 = vst [vmem:[#allocation2 + $0x48] sm:$0xff] %v1081_v45  ;;  %v1083_v55 = vmul.f32 %v1067_v46, %v1043_v51 }
 0x3d2   :  { %1098 = vst [vmem:[#allocation2 + $0x50] sm:$0xff] %v1082_v52 }
 0x3d3   :  { %1099 = vst [vmem:[#allocation2 + $0x58] sm:$0xff] %v1083_v55  ;;  %v946_v47 = vpop.f32.mrb[40].mxu0 }
 0x3d4   :  { %v1068_v43 = vmul.f32 %v946_v47, %v1676_v53  ;;  %v1047_v57 = vpop.f32.mrb[40].mxu1  ;;  %v948_v59 = vpop.f32.mrb[41].mxu0 }
 0x3d5   :  { %v1069_v60 = vmul.f32 %v948_v59, %v1662_v49  ;;  %v1049_v48 = vpop.f32.mrb[41].mxu1  ;;  %v950_v61 = vpop.f32.mrb[42].mxu0 }
 0x3d6   :  { %v1084_v62 = vmul.f32 %v1068_v43, %v1047_v57  ;;  %v1070_v63 = vmul.f32 %v950_v61, %v1681_v54  ;;  %v1051_v44 = vpop.f32.mrb[42].mxu1  ;;  %v952_v0 = vpop.f32.mrb[43].mxu0 }
 0x3d7   :  { %v1085_v1 = vmul.f32 %v1069_v60, %v1049_v48  ;;  %v1071_v2 = vmul.f32 %v952_v0, %v1667_v50  ;;  %v1053_v3 = vpop.f32.mrb[43].mxu1 }
 0x3d8   :  { %1100 = vst [vmem:[#allocation2 + $0x60] sm:$0xff] %v1084_v62  ;;  %v1086_v4 = vmul.f32 %v1070_v63, %v1051_v44 }
 0x3d9   :  { %1101 = vst [vmem:[#allocation2 + $0x68] sm:$0xff] %v1085_v1  ;;  %v1087_v53 = vmul.f32 %v1071_v2, %v1053_v3 }
 0x3da   :  { %1102 = vst [vmem:[#allocation2 + $0x70] sm:$0xff] %v1086_v4 }
 0x3db   :  { %1103 = vst [vmem:[#allocation2 + $0x78] sm:$0xff] %v1087_v53 }
 0x3dc   :  { %1424 = shalt.err (!%p1421_p4)
}
 0x3dd   :  { %s1425_s20 = scalar_lea.hbm %s1802_s9, 2048 }
 0x3de   :  { %p1426_p5 = scmp.ne.s32.totalorder %s1802_s9, %s1425_s20  ;;  %p1429_p6 = scmp.lt.u32.totalorder %s1425_s20, %s1802_s9 }
 0x3e0   :  { %p1431_p7 = pnand %p1429_p6, %p1426_p5 }
 0x3e2   :  { %1434 = shalt.err (!%p1431_p7)
}
 0x3e3   :  { %s1441_s3 = smov 256   ;;  %s1442_s25 = smov 16  }
 0x3e4   :  { %1115 = dma.vmem_to_hbm [thread:$0]  %s1110_s8, 2048, %s1802_s9, [#allocation3], %s1441_s3, %s1441_s3, %s1442_s25  }
 0x3e5   :  { %1435 = dma.done.wait [#allocation3], 2048  }
 0x3e6   :  { %1436 = vsyncadd [#allocation3], 4294965248 }
 0x3e7   :  { %1119 = vsyncpa [#allocation3], 1 }

</bundles_post_ra>
